<compile_context>
chip_gen: v7x
topology: tpu7x:2x2x1
jax: 0.10.0
libtpu: 0.0.40
codegen_flags: <defaults>
</compile_context>

<pallas_src>
import functools

import jax
import jax.numpy as jnp
from jax.experimental import pallas as pl
from jax.experimental.pallas import tpu as pltpu


_VMEM_SPEC = pl.BlockSpec(memory_space=pltpu.MemorySpace.VMEM)


# ----------------------------------------------------------------------------
# Fused Pallas kernel: full GATModel forward
# ----------------------------------------------------------------------------
def fused_gat_kernel(layer_dims, *refs):
  """GATConv stack + ReLU + mean-pool + MLP head, fully in VMEM.

  refs layout:
    x,
    [W_bf, wa_src_t_bf, wa_dst_bf, ae_bf16, bias_f32] * L,
    W1_bf, b1, W2_bf, b2,
    out,
    act_scratch (VMEM, [N, max_width] f32).
  """
  n_layers = len(layer_dims)
  x_ref = refs[0]
  lrefs = refs[1:1 + 5 * n_layers]
  w1_ref, b1_ref, w2_ref, b2_ref = refs[1 + 5 * n_layers: 5 + 5 * n_layers]
  o_ref = refs[-2]
  act_ref = refs[-1]

  x = x_ref[...]                                                    # [N, F0] f32
  for l, (H, C) in enumerate(layer_dims):
    w_ref, wasrc_ref, wadst_ref, ae_ref, bias_ref = lrefs[5 * l: 5 * l + 5]
    x_bf = x.astype(jnp.bfloat16)                                   # MXU operand only

    # Node feature projection (per-head blocks concatenated along lanes).
    xw = jnp.dot(x_bf, w_ref[...], preferred_element_type=jnp.float32)   # [N, H*C]
    xw_bf = xw.astype(jnp.bfloat16)

    # a_src directly in [H, N] layout (A.B^T contraction -> no XLU transpose).
    a_src_t = jax.lax.dot_general(
        wasrc_ref[...], x_bf, (((1,), (1,)), ((), ())),
        preferred_element_type=jnp.float32)                         # [H, N]
    # a_dst in [N, H] (column layout needed for the row-wise broadcast).
    a_dst = jnp.dot(x_bf, wadst_ref[...],
                    preferred_element_type=jnp.float32)             # [N, H]

    width = H * C
    for h in range(H):                       # small static head loop
      # logits[i, j] = a_dst[i,h] + a_src[j,h] + ae[h,i,j]
      # ae[h,i,j] = edge-attention logit for edge j->i, -1e30 for non-edges
      # (bf16 in HBM/VMEM; f32 in the softmax math).
      logits = (a_dst[:, h:h + 1] + a_src_t[h:h + 1, :]
                + ae_ref[h].astype(jnp.float32))                    # [N, N]
      logits = jnp.maximum(logits, 0.2 * logits)                    # LeakyReLU(0.2)
      m = jnp.max(logits, axis=1, keepdims=True)                    # finite (self-loops)
      p = jnp.exp(logits - m)                                       # non-edges -> 0
      denom = jnp.sum(p, axis=1, keepdims=True)                     # >= 1
      att = p * pl.reciprocal(denom, approx=True)
      out_h = jnp.dot(att.astype(jnp.bfloat16), xw_bf[:, h * C:(h + 1) * C],
                      preferred_element_type=jnp.float32)           # [N, C]
      # Fused bias + ReLU, written straight into the layer-activation scratch
      # (no Python-list concatenate / lane-concat relayout).
      act_ref[:, h * C:(h + 1) * C] = jnp.maximum(
          out_h + bias_ref[:, h * C:(h + 1) * C], 0.0)

    x = act_ref[:, :width]                                          # next-layer input

  # Readout: mean over nodes (batch=None) -> Linear -> ReLU -> Linear.
  pooled = jnp.mean(x, axis=0, keepdims=True)                       # [1, F]
  h1 = jnp.dot(pooled.astype(jnp.bfloat16), w1_ref[...],
               preferred_element_type=jnp.float32) + b1_ref[...]
  h1 = jnp.maximum(h1, 0.0)
  o_ref[...] = jnp.dot(h1.astype(jnp.bfloat16), w2_ref[...],
                       preferred_element_type=jnp.float32) + b2_ref[...]


# ----------------------------------------------------------------------------
# One-time host-side prep (hoisted out of the per-forward path)
# ----------------------------------------------------------------------------
def _glorot(key, shape):
  lim = (6.0 / (shape[0] + shape[1])) ** 0.5
  return jax.random.uniform(key, shape, jnp.float32, -lim, lim)


def init_params(key, num_layers, heads, input_dim, hidden_dim, edge_dim):
  params = {"layers": []}
  in_dim = input_dim
  for i in range(num_layers):
    H, C = heads[i], hidden_dim[i]
    k = jax.random.fold_in(key, i)
    ks = jax.random.split(k, 5)
    params["layers"].append({
        "H": H, "C": C,
        "W":        _glorot(ks[0], (in_dim, H * C)),      # lin_src (no bias)
        "W_edge":   _glorot(ks[1], (edge_dim, H * C)),    # lin_edge (no bias)
        "att_src":  _glorot(ks[2], (H, C)),
        "att_dst":  _glorot(ks[3], (H, C)),
        "att_edge": _glorot(ks[4], (H, C)),
        "bias":     jnp.zeros((H * C,), jnp.float32),
    })
    in_dim = H * C
  F = heads[-1] * hidden_dim[-1]
  kd = jax.random.fold_in(key, 1000)
  kds = jax.random.split(kd, 2)
  params["dense"] = {
      "W1": _glorot(kds[0], (F, 2 * F)), "b1": jnp.zeros((2 * F,), jnp.float32),
      "W2": _glorot(kds[1], (2 * F, 2)), "b2": jnp.zeros((2,), jnp.float32),
  }
  return params


def add_self_loops_mean(edge_index, edge_attr, num_nodes):
  """PyG add_self_loops(..., fill_value='mean'): loop attr = mean of incoming edge attrs."""
  src, dst = edge_index[0], edge_index[1]
  sums = jnp.zeros((num_nodes, edge_attr.shape[1]), jnp.float32).at[dst].add(edge_attr)
  cnts = jnp.zeros((num_nodes, 1), jnp.float32).at[dst].add(1.0)
  loop_attr = sums / jnp.maximum(cnts, 1.0)
  loop = jnp.arange(num_nodes, dtype=src.dtype)
  return (jnp.concatenate([src, loop]),
          jnp.concatenate([dst, loop]),
          jnp.concatenate([edge_attr, loop_attr], axis=0))


def prepare_model(params, x_dim, edge_index, edge_attr, num_nodes, edge_dim):
  """Fold attention vectors into weights, build the masked dense edge-logit
  tensors (bf16), pre-cast MXU weights to bf16, and flatten everything into
  the kernel's positional-arg order."""
  src, dst, edge_attr_full = add_self_loops_mean(edge_index, edge_attr, num_nodes)
  layer_dims = []
  flat = []
  in_dim = x_dim
  for lp in params["layers"]:
    H, C = lp["H"], lp["C"]
    w = lp["W"]                                                             # [Fin, H*C]
    w_asrc = (w.reshape(in_dim, H, C) * lp["att_src"][None]).sum(-1)        # [Fin, H]
    w_adst = (w.reshape(in_dim, H, C) * lp["att_dst"][None]).sum(-1)        # [Fin, H]
    w_ae = (lp["W_edge"].reshape(edge_dim, H, C) * lp["att_edge"][None]).sum(-1)
    alpha_e = edge_attr_full @ w_ae                                         # [E', H]
    ae_masked = jnp.full((H, num_nodes, num_nodes), -1e30, jnp.float32)
    ae_masked = ae_masked.at[:, dst, src].set(alpha_e.T)                    # edge bias / -1e30 mask
    flat += [w.astype(jnp.bfloat16),                 # W_bf      [Fin, H*C]
             w_asrc.T.astype(jnp.bfloat16),          # wa_src_t  [H, Fin]
             w_adst.astype(jnp.bfloat16),            # wa_dst    [Fin, H]
             ae_masked.astype(jnp.bfloat16),         # ae (bf16) [H, N, N]
             lp["bias"][None, :]]                    # bias f32  [1, H*C]
    layer_dims.append((H, C))
    in_dim = H * C
  dp = params["dense"]
  flat += [dp["W1"].astype(jnp.bfloat16), dp["b1"][None, :],
           dp["W2"].astype(jnp.bfloat16), dp["b2"][None, :]]
  return tuple(layer_dims), flat


# ----------------------------------------------------------------------------
# Per-forward path: one pallas_call
# ----------------------------------------------------------------------------
@functools.partial(jax.jit, static_argnums=0)
def gat_model_forward(layer_dims, x, *flat_inputs):
  n = x.shape[0]
  max_width = max(H * C for H, C in layer_dims)

  # Explicit scoped-VMEM budget: actual resident footprint + headroom,
  # floored at 32 MiB (safe on all generations), capped below v5e/v6e physical.
  total_bytes = sum(int(a.size) * a.dtype.itemsize for a in (x,) + flat_inputs)
  total_bytes += n * max_width * 4 + 8
  vmem_budget = int(min(100 << 20, max(32 << 20, 2 * total_bytes + (2 << 20))))

  # TODO(synk): add a "parallel" dst-tile grid axis (v7x megacore) once the
  #             dst-tiled online-softmax path lands; gridless here.
  return pl.pallas_call(
      functools.partial(fused_gat_kernel, layer_dims),
      out_shape=jax.ShapeDtypeStruct((1, 2), jnp.float32),
      in_specs=[_VMEM_SPEC] * (1 + len(flat_inputs)),
      out_specs=_VMEM_SPEC,
      scratch_shapes=[pltpu.VMEM((n, max_width), jnp.float32)],
      compiler_params=pltpu.CompilerParams(vmem_limit_bytes=vmem_budget),
  )(x, *flat_inputs)


# ----------------------------------------------------------------------------
if __name__ == "__main__":
  key = jax.random.PRNGKey(0)
  N, E = 8, 16
  num_layers = 2
  heads = [2, 2]
  input_dim = 4
  hidden_dim = [8, 8]
  edge_dim = 3
  dropout = 0.0  # eval mode: dropout is a no-op

  kx, ke, ka, kp = jax.random.split(key, 4)
  x = jax.random.normal(kx, (N, input_dim), jnp.float32)

  # Deterministic SIMPLE graph: unique (src, dst) pairs, no explicit self-loops,
  # so the dense masked-logit formulation matches PyG exactly.
  pairs = jnp.array([(s, d) for s in range(N) for d in range(N) if s != d],
                    dtype=jnp.int32)                              # [N*(N-1), 2]
  sel = jax.random.choice(ke, pairs.shape[0], (E,), replace=False)
  edge_index = pairs[sel].T                                       # [2, E]
  edge_attr = jax.random.normal(ka, (E, edge_dim), jnp.float32)   # [E, edge_dim]

  params = init_params(kp, num_layers, heads, input_dim, hidden_dim, edge_dim)

  # One-time prep (hoisted out of the forward path).
  layer_dims, flat_inputs = prepare_model(params, input_dim, edge_index,
                                          edge_attr, N, edge_dim)

  logits = gat_model_forward(layer_dims, x, *flat_inputs)
  logits = jax.block_until_ready(logits)
  assert logits.shape == (1, 2) and logits.dtype == jnp.float32
  assert bool(jnp.all(jnp.isfinite(logits)))
  print("KERNEL_OK")
</pallas_src>

<mosaic_0001>
module attributes {stable_mosaic.version = 11 : i64} {
  func.func @fused_gat_kernel(%arg0: memref<8x4xf32, #tpu.memory_space<vmem>>, %arg1: memref<4x16xbf16, #tpu.memory_space<vmem>>, %arg2: memref<2x4xbf16, #tpu.memory_space<vmem>>, %arg3: memref<4x2xbf16, #tpu.memory_space<vmem>>, %arg4: memref<2x8x8xbf16, #tpu.memory_space<vmem>>, %arg5: memref<1x16xf32, #tpu.memory_space<vmem>>, %arg6: memref<16x16xbf16, #tpu.memory_space<vmem>>, %arg7: memref<2x16xbf16, #tpu.memory_space<vmem>>, %arg8: memref<16x2xbf16, #tpu.memory_space<vmem>>, %arg9: memref<2x8x8xbf16, #tpu.memory_space<vmem>>, %arg10: memref<1x16xf32, #tpu.memory_space<vmem>>, %arg11: memref<16x32xbf16, #tpu.memory_space<vmem>>, %arg12: memref<1x32xf32, #tpu.memory_space<vmem>>, %arg13: memref<32x2xbf16, #tpu.memory_space<vmem>>, %arg14: memref<1x2xf32, #tpu.memory_space<vmem>>, %arg15: memref<1x2xf32, #tpu.memory_space<vmem>>, %arg16: memref<8x16xf32, #tpu.memory_space<vmem>>) attributes {dimension_semantics = [], scalar_prefetch = 0 : i64, scratch_operands = 1 : i64, tpu.core_type = #tpu.core_type<tc>} {
    %c0 = arith.constant 0 : index
    %c0_0 = arith.constant 0 : index
    %0 = vector.load %arg0[%c0, %c0_0] : memref<8x4xf32, #tpu.memory_space<vmem>>, vector<8x4xf32>
    %1 = arith.truncf %0 : vector<8x4xf32> to vector<8x4xbf16>
    %c0_1 = arith.constant 0 : index
    %c0_2 = arith.constant 0 : index
    %2 = vector.load %arg1[%c0_1, %c0_2] : memref<4x16xbf16, #tpu.memory_space<vmem>>, vector<4x16xbf16>
    %cst = arith.constant dense<0.000000e+00> : vector<8x16xf32>
    %3 = tpu.matmul %1, %2, %cst {dimension_numbers = #tpu.dot_dimension_numbers<[1], [0], [0], [1], [0, 0, 1, 1], [], []>} : vector<8x4xbf16>, vector<4x16xbf16>, vector<8x16xf32> -> vector<8x16xf32>
    %4 = arith.truncf %3 : vector<8x16xf32> to vector<8x16xbf16>
    %c0_3 = arith.constant 0 : index
    %c0_4 = arith.constant 0 : index
    %5 = vector.load %arg2[%c0_3, %c0_4] : memref<2x4xbf16, #tpu.memory_space<vmem>>, vector<2x4xbf16>
    %cst_5 = arith.constant dense<0.000000e+00> : vector<2x8xf32>
    %6 = tpu.matmul %5, %1, %cst_5 {dimension_numbers = #tpu.dot_dimension_numbers<[1], [1], [0], [0], [0, 0, 1, 0], [], []>} : vector<2x4xbf16>, vector<8x4xbf16>, vector<2x8xf32> -> vector<2x8xf32>
    %c0_6 = arith.constant 0 : index
    %c0_7 = arith.constant 0 : index
    %7 = vector.load %arg3[%c0_6, %c0_7] : memref<4x2xbf16, #tpu.memory_space<vmem>>, vector<4x2xbf16>
    %cst_8 = arith.constant dense<0.000000e+00> : vector<8x2xf32>
    %8 = tpu.matmul %1, %7, %cst_8 {dimension_numbers = #tpu.dot_dimension_numbers<[1], [0], [0], [1], [0, 0, 1, 1], [], []>} : vector<8x4xbf16>, vector<4x2xbf16>, vector<8x2xf32> -> vector<8x2xf32>
    %9 = vector.extract_strided_slice %8 {offsets = [0, 0], sizes = [8, 1], strides = [1, 1]} : vector<8x2xf32> to vector<8x1xf32>
    %10 = vector.extract_strided_slice %6 {offsets = [0, 0], sizes = [1, 8], strides = [1, 1]} : vector<2x8xf32> to vector<1x8xf32>
    %11 = vector.broadcast %9 : vector<8x1xf32> to vector<8x8xf32>
    %12 = vector.broadcast %10 : vector<1x8xf32> to vector<8x8xf32>
    %13 = arith.addf %11, %12 : vector<8x8xf32>
    %c0_9 = arith.constant 0 : index
    %c0_10 = arith.constant 0 : index
    %c0_11 = arith.constant 0 : index
    %14 = vector.load %arg4[%c0_9, %c0_10, %c0_11] : memref<2x8x8xbf16, #tpu.memory_space<vmem>>, vector<1x8x8xbf16>
    %15 = vector.shape_cast %14 : vector<1x8x8xbf16> to vector<8x8xbf16>
    %16 = arith.extf %15 : vector<8x8xbf16> to vector<8x8xf32>
    %17 = arith.addf %13, %16 : vector<8x8xf32>
    %cst_12 = arith.constant 2.000000e-01 : f32
    %18 = vector.broadcast %cst_12 : f32 to vector<8x8xf32>
    %19 = arith.mulf %18, %17 : vector<8x8xf32>
    %20 = arith.maximumf %17, %19 : vector<8x8xf32>
    %cst_13 = arith.constant dense<0xFF800000> : vector<8xf32>
    %21 = vector.multi_reduction <maximumf>, %20, %cst_13 [1] : vector<8x8xf32> to vector<8xf32>
    %22 = vector.shape_cast %21 : vector<8xf32> to vector<8x1xf32>
    %23 = vector.broadcast %22 : vector<8x1xf32> to vector<8x8xf32>
    %24 = arith.subf %20, %23 : vector<8x8xf32>
    %25 = math.exp %24 : vector<8x8xf32>
    %cst_14 = arith.constant dense<0.000000e+00> : vector<8xf32>
    %26 = vector.multi_reduction <add>, %25, %cst_14 [1] : vector<8x8xf32> to vector<8xf32>
    %27 = vector.shape_cast %26 : vector<8xf32> to vector<8x1xf32>
    %28 = tpu.reciprocal %27 {approx = true} : vector<8x1xf32> -> vector<8x1xf32>
    %29 = vector.broadcast %28 : vector<8x1xf32> to vector<8x8xf32>
    %30 = arith.mulf %25, %29 : vector<8x8xf32>
    %31 = arith.truncf %30 : vector<8x8xf32> to vector<8x8xbf16>
    %32 = vector.extract_strided_slice %4 {offsets = [0, 0], sizes = [8, 8], strides = [1, 1]} : vector<8x16xbf16> to vector<8x8xbf16>
    %cst_15 = arith.constant dense<0.000000e+00> : vector<8x8xf32>
    %33 = tpu.matmul %31, %32, %cst_15 {dimension_numbers = #tpu.dot_dimension_numbers<[1], [0], [0], [1], [0, 0, 1, 1], [], []>} : vector<8x8xbf16>, vector<8x8xbf16>, vector<8x8xf32> -> vector<8x8xf32>
    %c0_16 = arith.constant 0 : index
    %c0_17 = arith.constant 0 : index
    %34 = vector.load %arg5[%c0_16, %c0_17] : memref<1x16xf32, #tpu.memory_space<vmem>>, vector<1x8xf32>
    %35 = vector.broadcast %34 : vector<1x8xf32> to vector<8x8xf32>
    %36 = arith.addf %33, %35 : vector<8x8xf32>
    %cst_18 = arith.constant 0.000000e+00 : f32
    %37 = vector.broadcast %cst_18 : f32 to vector<8x8xf32>
    %38 = arith.maximumf %36, %37 : vector<8x8xf32>
    %c0_19 = arith.constant 0 : index
    %c0_20 = arith.constant 0 : index
    %39 = vector.load %arg16[%c0_19, %c0_20] : memref<8x16xf32, #tpu.memory_space<vmem>>, vector<8x8xf32>
    tpu.vector_store %arg16[%c0_19, %c0_20], %38 {strides = array<i32>} : memref<8x16xf32, #tpu.memory_space<vmem>>, vector<8x8xf32>,
    %40 = vector.extract_strided_slice %8 {offsets = [0, 1], sizes = [8, 1], strides = [1, 1]} : vector<8x2xf32> to vector<8x1xf32>
    %41 = vector.extract_strided_slice %6 {offsets = [1, 0], sizes = [1, 8], strides = [1, 1]} : vector<2x8xf32> to vector<1x8xf32>
    %42 = vector.broadcast %40 : vector<8x1xf32> to vector<8x8xf32>
    %43 = vector.broadcast %41 : vector<1x8xf32> to vector<8x8xf32>
    %44 = arith.addf %42, %43 : vector<8x8xf32>
    %c1 = arith.constant 1 : index
    %c0_21 = arith.constant 0 : index
    %c0_22 = arith.constant 0 : index
    %45 = vector.load %arg4[%c1, %c0_21, %c0_22] : memref<2x8x8xbf16, #tpu.memory_space<vmem>>, vector<1x8x8xbf16>
    %46 = vector.shape_cast %45 : vector<1x8x8xbf16> to vector<8x8xbf16>
    %47 = arith.extf %46 : vector<8x8xbf16> to vector<8x8xf32>
    %48 = arith.addf %44, %47 : vector<8x8xf32>
    %cst_23 = arith.constant 2.000000e-01 : f32
    %49 = vector.broadcast %cst_23 : f32 to vector<8x8xf32>
    %50 = arith.mulf %49, %48 : vector<8x8xf32>
    %51 = arith.maximumf %48, %50 : vector<8x8xf32>
    %cst_24 = arith.constant dense<0xFF800000> : vector<8xf32>
    %52 = vector.multi_reduction <maximumf>, %51, %cst_24 [1] : vector<8x8xf32> to vector<8xf32>
    %53 = vector.shape_cast %52 : vector<8xf32> to vector<8x1xf32>
    %54 = vector.broadcast %53 : vector<8x1xf32> to vector<8x8xf32>
    %55 = arith.subf %51, %54 : vector<8x8xf32>
    %56 = math.exp %55 : vector<8x8xf32>
    %cst_25 = arith.constant dense<0.000000e+00> : vector<8xf32>
    %57 = vector.multi_reduction <add>, %56, %cst_25 [1] : vector<8x8xf32> to vector<8xf32>
    %58 = vector.shape_cast %57 : vector<8xf32> to vector<8x1xf32>
    %59 = tpu.reciprocal %58 {approx = true} : vector<8x1xf32> -> vector<8x1xf32>
    %60 = vector.broadcast %59 : vector<8x1xf32> to vector<8x8xf32>
    %61 = arith.mulf %56, %60 : vector<8x8xf32>
    %62 = arith.truncf %61 : vector<8x8xf32> to vector<8x8xbf16>
    %63 = vector.extract_strided_slice %4 {offsets = [0, 8], sizes = [8, 8], strides = [1, 1]} : vector<8x16xbf16> to vector<8x8xbf16>
    %cst_26 = arith.constant dense<0.000000e+00> : vector<8x8xf32>
    %64 = tpu.matmul %62, %63, %cst_26 {dimension_numbers = #tpu.dot_dimension_numbers<[1], [0], [0], [1], [0, 0, 1, 1], [], []>} : vector<8x8xbf16>, vector<8x8xbf16>, vector<8x8xf32> -> vector<8x8xf32>
    %c0_27 = arith.constant 0 : index
    %c8 = arith.constant 8 : index
    %65 = vector.load %arg5[%c0_27, %c8] : memref<1x16xf32, #tpu.memory_space<vmem>>, vector<1x8xf32>
    %66 = vector.broadcast %65 : vector<1x8xf32> to vector<8x8xf32>
    %67 = arith.addf %64, %66 : vector<8x8xf32>
    %cst_28 = arith.constant 0.000000e+00 : f32
    %68 = vector.broadcast %cst_28 : f32 to vector<8x8xf32>
    %69 = arith.maximumf %67, %68 : vector<8x8xf32>
    %c0_29 = arith.constant 0 : index
    %c8_30 = arith.constant 8 : index
    %70 = vector.load %arg16[%c0_29, %c8_30] : memref<8x16xf32, #tpu.memory_space<vmem>>, vector<8x8xf32>
    tpu.vector_store %arg16[%c0_29, %c8_30], %69 {strides = array<i32>} : memref<8x16xf32, #tpu.memory_space<vmem>>, vector<8x8xf32>,
    %c0_31 = arith.constant 0 : index
    %c0_32 = arith.constant 0 : index
    %71 = vector.load %arg16[%c0_31, %c0_32] : memref<8x16xf32, #tpu.memory_space<vmem>>, vector<8x16xf32>
    %72 = arith.truncf %71 : vector<8x16xf32> to vector<8x16xbf16>
    %c0_33 = arith.constant 0 : index
    %c0_34 = arith.constant 0 : index
    %73 = vector.load %arg6[%c0_33, %c0_34] : memref<16x16xbf16, #tpu.memory_space<vmem>>, vector<16x16xbf16>
    %cst_35 = arith.constant dense<0.000000e+00> : vector<8x16xf32>
    %74 = tpu.matmul %72, %73, %cst_35 {dimension_numbers = #tpu.dot_dimension_numbers<[1], [0], [0], [1], [0, 0, 1, 1], [], []>} : vector<8x16xbf16>, vector<16x16xbf16>, vector<8x16xf32> -> vector<8x16xf32>
    %75 = arith.truncf %74 : vector<8x16xf32> to vector<8x16xbf16>
    %c0_36 = arith.constant 0 : index
    %c0_37 = arith.constant 0 : index
    %76 = vector.load %arg7[%c0_36, %c0_37] : memref<2x16xbf16, #tpu.memory_space<vmem>>, vector<2x16xbf16>
    %cst_38 = arith.constant dense<0.000000e+00> : vector<2x8xf32>
    %77 = tpu.matmul %76, %72, %cst_38 {dimension_numbers = #tpu.dot_dimension_numbers<[1], [1], [0], [0], [0, 0, 1, 0], [], []>} : vector<2x16xbf16>, vector<8x16xbf16>, vector<2x8xf32> -> vector<2x8xf32>
    %c0_39 = arith.constant 0 : index
    %c0_40 = arith.constant 0 : index
    %78 = vector.load %arg8[%c0_39, %c0_40] : memref<16x2xbf16, #tpu.memory_space<vmem>>, vector<16x2xbf16>
    %cst_41 = arith.constant dense<0.000000e+00> : vector<8x2xf32>
    %79 = tpu.matmul %72, %78, %cst_41 {dimension_numbers = #tpu.dot_dimension_numbers<[1], [0], [0], [1], [0, 0, 1, 1], [], []>} : vector<8x16xbf16>, vector<16x2xbf16>, vector<8x2xf32> -> vector<8x2xf32>
    %80 = vector.extract_strided_slice %79 {offsets = [0, 0], sizes = [8, 1], strides = [1, 1]} : vector<8x2xf32> to vector<8x1xf32>
    %81 = vector.extract_strided_slice %77 {offsets = [0, 0], sizes = [1, 8], strides = [1, 1]} : vector<2x8xf32> to vector<1x8xf32>
    %82 = vector.broadcast %80 : vector<8x1xf32> to vector<8x8xf32>
    %83 = vector.broadcast %81 : vector<1x8xf32> to vector<8x8xf32>
    %84 = arith.addf %82, %83 : vector<8x8xf32>
    %c0_42 = arith.constant 0 : index
    %c0_43 = arith.constant 0 : index
    %c0_44 = arith.constant 0 : index
    %85 = vector.load %arg9[%c0_42, %c0_43, %c0_44] : memref<2x8x8xbf16, #tpu.memory_space<vmem>>, vector<1x8x8xbf16>
    %86 = vector.shape_cast %85 : vector<1x8x8xbf16> to vector<8x8xbf16>
    %87 = arith.extf %86 : vector<8x8xbf16> to vector<8x8xf32>
    %88 = arith.addf %84, %87 : vector<8x8xf32>
    %cst_45 = arith.constant 2.000000e-01 : f32
    %89 = vector.broadcast %cst_45 : f32 to vector<8x8xf32>
    %90 = arith.mulf %89, %88 : vector<8x8xf32>
    %91 = arith.maximumf %88, %90 : vector<8x8xf32>
    %cst_46 = arith.constant dense<0xFF800000> : vector<8xf32>
    %92 = vector.multi_reduction <maximumf>, %91, %cst_46 [1] : vector<8x8xf32> to vector<8xf32>
    %93 = vector.shape_cast %92 : vector<8xf32> to vector<8x1xf32>
    %94 = vector.broadcast %93 : vector<8x1xf32> to vector<8x8xf32>
    %95 = arith.subf %91, %94 : vector<8x8xf32>
    %96 = math.exp %95 : vector<8x8xf32>
    %cst_47 = arith.constant dense<0.000000e+00> : vector<8xf32>
    %97 = vector.multi_reduction <add>, %96, %cst_47 [1] : vector<8x8xf32> to vector<8xf32>
    %98 = vector.shape_cast %97 : vector<8xf32> to vector<8x1xf32>
    %99 = tpu.reciprocal %98 {approx = true} : vector<8x1xf32> -> vector<8x1xf32>
    %100 = vector.broadcast %99 : vector<8x1xf32> to vector<8x8xf32>
    %101 = arith.mulf %96, %100 : vector<8x8xf32>
    %102 = arith.truncf %101 : vector<8x8xf32> to vector<8x8xbf16>
    %103 = vector.extract_strided_slice %75 {offsets = [0, 0], sizes = [8, 8], strides = [1, 1]} : vector<8x16xbf16> to vector<8x8xbf16>
    %cst_48 = arith.constant dense<0.000000e+00> : vector<8x8xf32>
    %104 = tpu.matmul %102, %103, %cst_48 {dimension_numbers = #tpu.dot_dimension_numbers<[1], [0], [0], [1], [0, 0, 1, 1], [], []>} : vector<8x8xbf16>, vector<8x8xbf16>, vector<8x8xf32> -> vector<8x8xf32>
    %c0_49 = arith.constant 0 : index
    %c0_50 = arith.constant 0 : index
    %105 = vector.load %arg10[%c0_49, %c0_50] : memref<1x16xf32, #tpu.memory_space<vmem>>, vector<1x8xf32>
    %106 = vector.broadcast %105 : vector<1x8xf32> to vector<8x8xf32>
    %107 = arith.addf %104, %106 : vector<8x8xf32>
    %cst_51 = arith.constant 0.000000e+00 : f32
    %108 = vector.broadcast %cst_51 : f32 to vector<8x8xf32>
    %109 = arith.maximumf %107, %108 : vector<8x8xf32>
    %c0_52 = arith.constant 0 : index
    %c0_53 = arith.constant 0 : index
    %110 = vector.load %arg16[%c0_52, %c0_53] : memref<8x16xf32, #tpu.memory_space<vmem>>, vector<8x8xf32>
    tpu.vector_store %arg16[%c0_52, %c0_53], %109 {strides = array<i32>} : memref<8x16xf32, #tpu.memory_space<vmem>>, vector<8x8xf32>,
    %111 = vector.extract_strided_slice %79 {offsets = [0, 1], sizes = [8, 1], strides = [1, 1]} : vector<8x2xf32> to vector<8x1xf32>
    %112 = vector.extract_strided_slice %77 {offsets = [1, 0], sizes = [1, 8], strides = [1, 1]} : vector<2x8xf32> to vector<1x8xf32>
    %113 = vector.broadcast %111 : vector<8x1xf32> to vector<8x8xf32>
    %114 = vector.broadcast %112 : vector<1x8xf32> to vector<8x8xf32>
    %115 = arith.addf %113, %114 : vector<8x8xf32>
    %c1_54 = arith.constant 1 : index
    %c0_55 = arith.constant 0 : index
    %c0_56 = arith.constant 0 : index
    %116 = vector.load %arg9[%c1_54, %c0_55, %c0_56] : memref<2x8x8xbf16, #tpu.memory_space<vmem>>, vector<1x8x8xbf16>
    %117 = vector.shape_cast %116 : vector<1x8x8xbf16> to vector<8x8xbf16>
    %118 = arith.extf %117 : vector<8x8xbf16> to vector<8x8xf32>
    %119 = arith.addf %115, %118 : vector<8x8xf32>
    %cst_57 = arith.constant 2.000000e-01 : f32
    %120 = vector.broadcast %cst_57 : f32 to vector<8x8xf32>
    %121 = arith.mulf %120, %119 : vector<8x8xf32>
    %122 = arith.maximumf %119, %121 : vector<8x8xf32>
    %cst_58 = arith.constant dense<0xFF800000> : vector<8xf32>
    %123 = vector.multi_reduction <maximumf>, %122, %cst_58 [1] : vector<8x8xf32> to vector<8xf32>
    %124 = vector.shape_cast %123 : vector<8xf32> to vector<8x1xf32>
    %125 = vector.broadcast %124 : vector<8x1xf32> to vector<8x8xf32>
    %126 = arith.subf %122, %125 : vector<8x8xf32>
    %127 = math.exp %126 : vector<8x8xf32>
    %cst_59 = arith.constant dense<0.000000e+00> : vector<8xf32>
    %128 = vector.multi_reduction <add>, %127, %cst_59 [1] : vector<8x8xf32> to vector<8xf32>
    %129 = vector.shape_cast %128 : vector<8xf32> to vector<8x1xf32>
    %130 = tpu.reciprocal %129 {approx = true} : vector<8x1xf32> -> vector<8x1xf32>
    %131 = vector.broadcast %130 : vector<8x1xf32> to vector<8x8xf32>
    %132 = arith.mulf %127, %131 : vector<8x8xf32>
    %133 = arith.truncf %132 : vector<8x8xf32> to vector<8x8xbf16>
    %134 = vector.extract_strided_slice %75 {offsets = [0, 8], sizes = [8, 8], strides = [1, 1]} : vector<8x16xbf16> to vector<8x8xbf16>
    %cst_60 = arith.constant dense<0.000000e+00> : vector<8x8xf32>
    %135 = tpu.matmul %133, %134, %cst_60 {dimension_numbers = #tpu.dot_dimension_numbers<[1], [0], [0], [1], [0, 0, 1, 1], [], []>} : vector<8x8xbf16>, vector<8x8xbf16>, vector<8x8xf32> -> vector<8x8xf32>
    %c0_61 = arith.constant 0 : index
    %c8_62 = arith.constant 8 : index
    %136 = vector.load %arg10[%c0_61, %c8_62] : memref<1x16xf32, #tpu.memory_space<vmem>>, vector<1x8xf32>
    %137 = vector.broadcast %136 : vector<1x8xf32> to vector<8x8xf32>
    %138 = arith.addf %135, %137 : vector<8x8xf32>
    %cst_63 = arith.constant 0.000000e+00 : f32
    %139 = vector.broadcast %cst_63 : f32 to vector<8x8xf32>
    %140 = arith.maximumf %138, %139 : vector<8x8xf32>
    %c0_64 = arith.constant 0 : index
    %c8_65 = arith.constant 8 : index
    %141 = vector.load %arg16[%c0_64, %c8_65] : memref<8x16xf32, #tpu.memory_space<vmem>>, vector<8x8xf32>
    tpu.vector_store %arg16[%c0_64, %c8_65], %140 {strides = array<i32>} : memref<8x16xf32, #tpu.memory_space<vmem>>, vector<8x8xf32>,
    %c0_66 = arith.constant 0 : index
    %c0_67 = arith.constant 0 : index
    %142 = vector.load %arg16[%c0_66, %c0_67] : memref<8x16xf32, #tpu.memory_space<vmem>>, vector<8x16xf32>
    %cst_68 = arith.constant dense<0.000000e+00> : vector<16xf32>
    %143 = vector.multi_reduction <add>, %142, %cst_68 [0] : vector<8x16xf32> to vector<16xf32>
    %144 = vector.shape_cast %143 : vector<16xf32> to vector<1x16xf32>
    %cst_69 = arith.constant 8.000000e+00 : f32
    %145 = vector.broadcast %cst_69 : f32 to vector<1x16xf32>
    %146 = arith.divf %144, %145 : vector<1x16xf32>
    %147 = arith.truncf %146 : vector<1x16xf32> to vector<1x16xbf16>
    %c0_70 = arith.constant 0 : index
    %c0_71 = arith.constant 0 : index
    %148 = vector.load %arg11[%c0_70, %c0_71] : memref<16x32xbf16, #tpu.memory_space<vmem>>, vector<16x32xbf16>
    %cst_72 = arith.constant dense<0.000000e+00> : vector<1x32xf32>
    %149 = tpu.matmul %147, %148, %cst_72 {dimension_numbers = #tpu.dot_dimension_numbers<[1], [0], [0], [1], [0, 0, 1, 1], [], []>} : vector<1x16xbf16>, vector<16x32xbf16>, vector<1x32xf32> -> vector<1x32xf32>
    %c0_73 = arith.constant 0 : index
    %c0_74 = arith.constant 0 : index
    %150 = vector.load %arg12[%c0_73, %c0_74] : memref<1x32xf32, #tpu.memory_space<vmem>>, vector<1x32xf32>
    %151 = arith.addf %149, %150 : vector<1x32xf32>
    %cst_75 = arith.constant 0.000000e+00 : f32
    %152 = vector.broadcast %cst_75 : f32 to vector<1x32xf32>
    %153 = arith.maximumf %151, %152 : vector<1x32xf32>
    %154 = arith.truncf %153 : vector<1x32xf32> to vector<1x32xbf16>
    %c0_76 = arith.constant 0 : index
    %c0_77 = arith.constant 0 : index
    %155 = vector.load %arg13[%c0_76, %c0_77] : memref<32x2xbf16, #tpu.memory_space<vmem>>, vector<32x2xbf16>
    %cst_78 = arith.constant dense<0.000000e+00> : vector<1x2xf32>
    %156 = tpu.matmul %154, %155, %cst_78 {dimension_numbers = #tpu.dot_dimension_numbers<[1], [0], [0], [1], [0, 0, 1, 1], [], []>} : vector<1x32xbf16>, vector<32x2xbf16>, vector<1x2xf32> -> vector<1x2xf32>
    %c0_79 = arith.constant 0 : index
    %c0_80 = arith.constant 0 : index
    %157 = vector.load %arg14[%c0_79, %c0_80] : memref<1x2xf32, #tpu.memory_space<vmem>>, vector<1x2xf32>
    %158 = arith.addf %156, %157 : vector<1x2xf32>
    %c0_81 = arith.constant 0 : index
    %c0_82 = arith.constant 0 : index
    %159 = vector.load %arg15[%c0_81, %c0_82] : memref<1x2xf32, #tpu.memory_space<vmem>>, vector<1x2xf32>
    tpu.vector_store %arg15[%c0_81, %c0_82], %158 {strides = array<i32>} : memref<1x2xf32, #tpu.memory_space<vmem>>, vector<1x2xf32>,
    return
  }
}

</mosaic_0001>

<bundles_post_ra>
// kernel: gat_model_forward.1
= control target key start
LH: loop header
LB: loop body
LE: loop exit
PB: predicated region body
PF: predicated region fallthrough
CT: control target
= control target key end

     0   :  { %vm59_vm0 = vcmask 1041408   ;;  %v1009_v2 = vmov 0.0   ;;  %vm1010_vm1 = vmmov 0   ;;  %vm55_vm2 = vcmask 31744   ;;  %s1242_s0 = inlined_call_operand.vmem [shape: f32[8,4], index: 0, kind: input, shape index: {}]   ;;  %s1243_s1 = inlined_call_operand.vmem [shape: bf16[4,16], index: 1, kind: input, shape index: {}]   ;;  %s1244_s2 = inlined_call_operand.vmem [shape: bf16[2,4], index: 2, kind: input, shape index: {}]   ;;  %s1245_s3 = inlined_call_operand.vmem [shape: bf16[4,2], index: 3, kind: input, shape index: {}]   ;;  %s1246_s4 = inlined_call_operand.vmem [shape: bf16[2,8,8], index: 4, kind: input, shape index: {}]   ;;  %s1247_s5 = inlined_call_operand.vmem [shape: f32[1,16], index: 5, kind: input, shape index: {}]   ;;  %s1248_s6 = inlined_call_operand.vmem [shape: bf16[16,16], index: 6, kind: input, shape index: {}]   ;;  %s1249_s7 = inlined_call_operand.vmem [shape: bf16[2,16], index: 7, kind: input, shape index: {}]   ;;  %s1250_s8 = inlined_call_operand.vmem [shape: bf16[16,2], index: 8, kind: input, shape index: {}]   ;;  %s1251_s9 = inlined_call_operand.vmem [shape: bf16[2,8,8], index: 9, kind: input, shape index: {}]   ;;  %s1252_s10 = inlined_call_operand.vmem [shape: f32[1,16], index: 10, kind: input, shape index: {}]   ;;  %s1253_s11 = inlined_call_operand.vmem [shape: bf16[16,32], index: 11, kind: input, shape index: {}]   ;;  %s1254_s12 = inlined_call_operand.vmem [shape: f32[1,32], index: 12, kind: input, shape index: {}]   ;;  %s1255_s13 = inlined_call_operand.vmem [shape: bf16[32,2], index: 13, kind: input, shape index: {}]   ;;  %s1256_s14 = inlined_call_operand.vmem [shape: f32[1,2], index: 14, kind: input, shape index: {}]   ;;  %s1257_s15 = inlined_call_operand.hbm [shape: f32[1,2], index: 15, kind: output, shape index: {}]  }
   0x1   :  { %v54_v0 = vld [vmem:[%s1243_s1] sm:$0x3]  ;;  %878 = vmatprep.subr.bf16.mxu0 %v1009_v2  ;;  %884 = vmatprep.subr.bf16.mxu1 %v1009_v2 }
   0x2   :  { %v148_v1 = vld [vmem:[%s1245_s3] sm:$0x3]  ;;  %v61_v3 = vsel %vm59_vm0, %v54_v0, 0  ;;  %880 = vmatprep.mubr.msk.bf16.mxu0 %vm1010_vm1, %v1009_v2  ;;  %886 = vmatprep.mubr.msk.bf16.mxu1 %vm1010_vm1, %v1009_v2 }
   0x3   :  { %v52_v4 = vld [vmem:[%s1242_s0] sm:$0xff]  ;;  %879 = vmatpush3.bf16.msra.mxu0 %v61_v3  ;;  %v150_v5 = vsel %vm59_vm0, %v148_v1, 0 }
   0x4   :  { %v53_v6 = vpack.c.bf16 %v52_v4, %v52_v4  ;;  %890 = vmatprep.subr.bf16.mxu0 %v1009_v2 }
   0x6   :  { %v57_v7 = vsel %vm55_vm2, %v53_v6, 0  ;;  %881 = vmatmul.mubr.msk.bf16.vlgmr.msra.gmra.mrb[0].mxu0 %vm55_vm2, %v53_v6 }
   0x7   :  { %885 = vmatpush3.bf16.xpose.msra.mxu1 %v57_v7  ;;  %891 = vmatpush3.bf16.msra.mxu0 %v150_v5 }
   0x8   :  { %892 = vmatprep.mubr.msk.bf16.mxu0 %vm1010_vm1, %v1009_v2 }
   0x9   :  { %20 = vsyncpa [#allocation4], 0  ;;  %896 = vmatprep.subr.bf16.mxu1 %v1009_v2  ;;  %902 = vmatprep.subr.bf16.mxu0 %v1009_v2  ;;  %v104_v8 = vld [vmem:[%s1244_s2] sm:$0x1]  ;;  %v1011_v9 = vmov 1   ;;  %vm230_vm3 = vcmask 1043456   ;;  %v197_v25 = vlaneseq }
   0xa   :  { %959 = vset.pattern.permute.xlu0 %v1011_v9  ;;  %v1012_v24 = vmov 0   ;;  %s1013_s2 = smov 120   ;;  %v835_v28 = vld [vmem:[%s1246_s4] sm:$0xff]   ;;  %vm207_vm4 = vcmask 64512   ;;  %s1014_s27 = smov 8   ;;  %vm366_vm5 = vcmask 130112  }
   0xb   :  { %v1129_v26 = vshrl.u32 %v197_v25, 7  ;;  %v287_v30 = vunpack.c.h.bf16 %v835_v28  ;;  %v203_v36 = vunpack.c.l.bf16 %v835_v28  ;;  %v836_v58 = vld [vmem:[%s1247_s5] ss:$0 sm:$0xff]  ;;  %vm378_vm6 = vcmask 130048   ;;  %s1015_s1 = smov [#allocation3]  }
   0xc   :  { %v964_v4 = vld [vmem:[%s1248_s6] sm:$0xff]   ;;  %vm770_vm7 = vcmask 261120   ;;  %vm814_vm8 = vcmask 8192  }
   0xd   :  { %v282_v27 = vsub.s32 1, %v1129_v26  ;;  %v199_v31 = vsub.s32 0, %v1129_v26  ;;  %v423_v25 = vld [vmem:[%s1249_s7] sm:$0x1] }
   0xe   :  { %887 = vmatmul.mubr.msk.bf16.vlgmr.msra.gmra.mrb[0].mxu1 %vm55_vm2, %v104_v8  ;;  %893 = vmatmul.mubr.msk.bf16.vlgmr.msra.gmra.mrb[4].mxu0 %vm55_vm2, %v53_v6 }
   0xf   :  { %898 = vmatprep.mubr.msk.bf16.mxu1 %vm1010_vm1, %v1009_v2  ;;  %904 = vmatprep.mubr.msk.bf16.mxu0 %vm1010_vm1, %v1009_v2 }
  0xd9   :  { %v97_v10 = vpop.f32.mrb[0].mxu0 }
  0xda   :  { %v103_v11 = vpack.c.bf16 %v97_v10, %v97_v10  ;;  %v882_v12 = vpop.f32.mrb[1].mxu0 }
  0xdb   :  { %v100_v13 = vpop.f32.mrb[2].mxu0 }
  0xdc   :  { %v232_v14 = vsel %vm230_vm3, %v103_v11, 0  ;;  %v883_v15 = vpop.f32.mrb[3].mxu0 }
  0xdd   :  { %897 = vmatpush3.bf16.msra.mxu1 %v232_v14 }
  0xde   :  { %908 = vmatprep.subr.bf16.mxu1 %v1009_v2 }
  0xe1   :  { %v142_v16 = vpop.f32.mrb[0].mxu1  ;;  %v186_v17 = vpop.f32.mrb[4].mxu0 }
  0xe2   :  { %v888_v18 = vpop.f32.mrb[1].mxu1  ;;  %277 = vperm.xlu0 %959, %v186_v17   ;;  %v894_v19 = vpop.f32.mrb[5].mxu0  ;;  %v283_v29 = vrot.slane %v142_v16, %v282_v27  ;;  %v200_v35 = vrot.slane %v142_v16, %v199_v31 }
  0xe3   :  { %v145_v20 = vpop.f32.mrb[2].mxu1  ;;  %v189_v21 = vpop.f32.mrb[6].mxu0 }
  0xe4   :  { %v889_v22 = vpop.f32.mrb[3].mxu1  ;;  %v895_v23 = vpop.f32.mrb[7].mxu0  ;;  %v965_v21 = vld [vmem:[%s1250_s8] sm:$0xff]  }
  0xe6   :  { %960 = vset.pattern.permute.xlu0 %v1012_v24 }
  0xe7   :  { %194 = vperm.xlu0 %960, %v186_v17  }
  0xeb   :  { %310 = vrot.lane.b32.xlu0 %v103_v11, %s1013_s2 }
  0xec   :  { %961 = vset.pattern.permute.xlu0 %v1011_v9 }
  0xef   :  { %312 = vrot.lane.b32.xlu0 %v836_v58, %s1013_s2 }
 0x161   :  { %v278_v32 = vpop.permute.xlu0 %277 }
 0x162   :  { %v284_v33 = vadd.f32 %v283_v29, %v278_v32 }
 0x164   :  { %v288_v34 = vadd.f32 %v287_v30, %v284_v33 }
 0x166   :  { %v195_v37 = vpop.permute.xlu0 %194  ;;  %v289_v38 = vmul.f32 0.2, %v288_v34 }
 0x167   :  { %v201_v39 = vadd.f32 %v200_v35, %v195_v37 }
 0x168   :  { %v290_v40 = vmax.f32 %v288_v34, %v289_v38 }
 0x169   :  { %v204_v41 = vadd.f32 %v203_v36, %v201_v39 }
 0x16a   :  { %v311_v42 = vpop.permute.xlu0 %310  ;;  %v291_v43 = vsel %vm207_vm4, %v290_v40, -inf }
 0x16b   :  { %v319_v44 = vsel %vm230_vm3, %v311_v42, 0  ;;  %292 = vmax.xlane.f32.xlu1 %v291_v43  ;;  %v205_v45 = vmul.f32 0.2, %v204_v41  ;;  %v845_v43 = vld [vmem:[%s1251_s9] sm:$0xff]  }
 0x16c   :  { %903 = vmatpush3.bf16.msra.mxu0 %v319_v44 }
 0x16d   :  { %v206_v46 = vmax.f32 %v204_v41, %v205_v45  ;;  %914 = vmatprep.subr.bf16.mxu0 %v1009_v2  ;;  %v608_v45 = vunpack.c.h.bf16 %v845_v43 }
 0x16e   :  { %v313_v5 = vpop.permute.xlu0 %312 }
 0x16f   :  { %v208_v47 = vsel %vm207_vm4, %v206_v46, -inf }
 0x170   :  { %209 = vmax.xlane.f32.xlu1 %v208_v47 }
 0x1f8   :  { %v293_v48 = vpop.xlane.xlu1 %292 }
 0x1f9   :  { %v294_v49 = vsub.f32 %v290_v40, %v293_v48 }
 0x1fb   :  { %v295_v50 = vmul.f32 1.442695, %v294_v49 }
 0x1fd   :  { %969 = vpow2.f32 %v295_v50  ;;  %v210_v51 = vpop.xlane.xlu1 %209  ;;  %v526_v50 = vunpack.c.l.bf16 %v845_v43  ;;  %v967_v43 = vld [vmem:[%s1255_s13] sm:$0xff]  }
 0x1fe   :  { %v211_v52 = vsub.f32 %v206_v46, %v210_v51 }
 0x200   :  { %v212_v53 = vmul.f32 1.442695, %v211_v52 }
 0x202   :  { %971 = vpow2.f32 %v212_v53 }
 0x207   :  { %v970_v54 = vpop.eup %969 }
 0x208   :  { %v297_v55 = vsel %vm207_vm4, %v970_v54, 0.0 }
 0x209   :  { %298 = vadd.xlane.f32.xlu1 %v297_v55 }
 0x20c   :  { %v972_v56 = vpop.eup %971 }
 0x20d   :  { %v214_v57 = vsel %vm207_vm4, %v972_v56, 0.0 }
 0x20e   :  { %215 = vadd.xlane.f32.xlu1 %v214_v57 }
 0x296   :  { %v299_v59 = vpop.xlane.xlu1 %298 }
 0x297   :  { %973 = vrcp.f32 %v299_v59 }
 0x29b   :  { %v216_v60 = vpop.xlane.xlu1 %215 }
 0x29c   :  { %975 = vrcp.f32 %v216_v60 }
 0x2a1   :  { %v974_v61 = vpop.eup %973 }
 0x2a2   :  { %v301_v62 = vmul.f32 %v974_v61, %v970_v54 }
 0x2a4   :  { %v302_v63 = vpack.c.bf16 %v301_v62, %v301_v62 }
 0x2a6   :  { %v976_v0 = vpop.eup %975  ;;  %905 = vmatmul.mubr.msk.bf16.vlgmr.msra.gmra.mrb[8].mxu0 %vm207_vm4, %v302_v63 }
 0x2a7   :  { %v218_v1 = vmul.f32 %v976_v0, %v972_v56  ;;  %916 = vmatprep.mubr.msk.bf16.mxu0 %vm1010_vm1, %v1009_v2 }
 0x2a9   :  { %v219_v3 = vpack.c.bf16 %v218_v1, %v218_v1 }
 0x2ab   :  { %899 = vmatmul.mubr.msk.bf16.vlgmr.msra.gmra.mrb[4].mxu1 %vm207_vm4, %v219_v3 }
 0x2ac   :  { %910 = vmatprep.mubr.msk.bf16.mxu1 %vm1010_vm1, %v1009_v2  ;;  %909 = vmatpush3.bf16.msra.mxu1 %v964_v4  ;;  %v846_v4 = vld [vmem:[%s1252_s10] ss:$0 sm:$0xff] }
 0x2ad   :  { %920 = vmatprep.subr.bf16.mxu1 %v1009_v2 }
 0x379   :  { %v355_v6 = vpop.f32.mrb[8].mxu0 }
 0x37a   :  { %v356_v7 = vadd.f32 %v355_v6, %v313_v5  ;;  %v906_v8 = vpop.f32.mrb[9].mxu0 }
 0x37b   :  { %v358_v10 = vpop.f32.mrb[10].mxu0 }
 0x37c   :  { %v361_v11 = vmax.f32 %v356_v7, 0.0  ;;  %v907_v12 = vpop.f32.mrb[11].mxu0 }
 0x37e   :  { %363 = vrot.lane.b32.xlu1 %v361_v11, %s1014_s27  ;;  %v268_v13 = vpop.f32.mrb[4].mxu1 }
 0x37f   :  { %v269_v14 = vadd.f32 %v836_v58, %v268_v13  ;;  %v900_v15 = vpop.f32.mrb[5].mxu1 }
 0x380   :  { %v271_v16 = vpop.f32.mrb[6].mxu1 }
 0x381   :  { %v274_v17 = vmax.f32 %v269_v14, 0.0  ;;  %v901_v18 = vpop.f32.mrb[7].mxu1  ;;  %v966_v14 = vld [vmem:[%s1253_s11] sm:$0xff]  }
 0x383   :  { %275 = vst.msk [vmem:[#allocation2] sm:$0xff] %vm207_vm4, %v274_v17 }
 0x3f0   :  { %v364_v19 = vpop.permute.xlu1 %363 }
 0x3f1   :  { %367 = vst.msk [vmem:[#allocation2] sm:$0xff] %vm366_vm5, %v364_v19 }
 0x3f8   :  { %v368_v20 = vld [vmem:[#allocation2] sm:$0xff] }
 0x3f9   :  { %v369_v22 = vpack.c.bf16 %v368_v20, %v368_v20 }
 0x3fb   :  { %911 = vmatmul.mubr.msk.bf16.vlgmr.msra.gmra.mrb[8].mxu1 %vm378_vm6, %v369_v22  ;;  %v380_v23 = vsel %vm378_vm6, %v369_v22, 0 }
 0x3fc   :  { %915 = vmatpush3.bf16.xpose.msra.mxu0 %v380_v23  ;;  %921 = vmatpush3.bf16.msra.mxu1 %v965_v21 }
 0x3fd   :  { %922 = vmatprep.mubr.msk.bf16.mxu1 %vm1010_vm1, %v1009_v2  ;;  %926 = vmatprep.subr.bf16.mxu0 %v1009_v2 }
 0x3fe   :  { %932 = vmatprep.subr.bf16.mxu1 %v1009_v2 }
 0x403   :  { %923 = vmatmul.mubr.msk.bf16.vlgmr.msra.gmra.mrb[12].mxu1 %vm378_vm6, %v369_v22  ;;  %917 = vmatmul.mubr.msk.bf16.vlgmr.msra.gmra.mrb[12].mxu0 %vm378_vm6, %v423_v25 }
 0x404   :  { %934 = vmatprep.mubr.msk.bf16.mxu1 %vm1010_vm1, %v1009_v2  ;;  %928 = vmatprep.mubr.msk.bf16.mxu0 %vm1010_vm1, %v1009_v2 }
 0x4ce   :  { %v416_v28 = vpop.f32.mrb[8].mxu1 }
 0x4cf   :  { %v422_v29 = vpack.c.bf16 %v416_v28, %v416_v28  ;;  %v912_v30 = vpop.f32.mrb[9].mxu1 }
 0x4d0   :  { %v419_v32 = vpop.f32.mrb[10].mxu1 }
 0x4d1   :  { %v553_v33 = vsel %vm230_vm3, %v422_v29, 0  ;;  %v913_v34 = vpop.f32.mrb[11].mxu1 }
 0x4d2   :  { %927 = vmatpush3.bf16.msra.mxu0 %v553_v33 }
 0x4d3   :  { %938 = vmatprep.subr.bf16.mxu0 %v1009_v2 }
 0x4d6   :  { %v509_v35 = vpop.f32.mrb[12].mxu1  ;;  %v461_v36 = vpop.f32.mrb[12].mxu0 }
 0x4d7   :  { %598 = vperm.xlu0 %961, %v509_v35   ;;  %v924_v37 = vpop.f32.mrb[13].mxu1  ;;  %v918_v38 = vpop.f32.mrb[13].mxu0  ;;  %v604_v44 = vrot.slane %v461_v36, %v282_v27  ;;  %v523_v49 = vrot.slane %v461_v36, %v199_v31 }
 0x4d8   :  { %v512_v39 = vpop.f32.mrb[14].mxu1  ;;  %v464_v40 = vpop.f32.mrb[14].mxu0 }
 0x4d9   :  { %v925_v41 = vpop.f32.mrb[15].mxu1  ;;  %v919_v42 = vpop.f32.mrb[15].mxu0 }
 0x4db   :  { %962 = vset.pattern.permute.xlu0 %v1012_v24 }
 0x4dc   :  { %517 = vperm.xlu0 %962, %v509_v35  }
 0x4e0   :  { %963 = vset.pattern.permute.xlu0 %v1011_v9 }
 0x556   :  { %v599_v46 = vpop.permute.xlu0 %598 }
 0x557   :  { %v605_v47 = vadd.f32 %v604_v44, %v599_v46  ;;  %v968_v44 = vld [vmem:[%s1255_s13 + $0x8] sm:$0xff]   ;;  %s822_s13 = sshll.u32 %s1015_s1, 4  ;;  %s823_s13 = int_to_ptr.vmem [resolvable:$true] %s822_s13 }
 0x558   :  { %p990_p1 = scmp.lt.s32.totalorder %s823_s13, %s823_s13 }
 0x559   :  { %v609_v48 = vadd.f32 %v608_v45, %v605_v47  ;;  %v701_v45 = vld [vmem:[%s1254_s12] sm:$0x1]  ;;  %s985_s12 = scalar_lea.vmem %s823_s13, 16 }
 0x55a   :  { %p986_p0 = scmp.ne.s32.totalorder %s823_s13, %s985_s12 }
 0x55b   :  { %v518_v51 = vpop.permute.xlu0 %517  ;;  %v610_v24 = vmul.f32 0.2, %v609_v48 }
 0x55c   :  { %v524_v52 = vadd.f32 %v523_v49, %v518_v51 }
 0x55d   :  { %v611_v53 = vmax.f32 %v609_v48, %v610_v24 }
 0x55e   :  { %v527_v9 = vadd.f32 %v526_v50, %v524_v52 }
 0x55f   :  { %v612_v54 = vsel %vm207_vm4, %v611_v53, -inf }
 0x560   :  { %613 = vmax.xlane.f32.xlu1 %v612_v54  ;;  %v528_v55 = vmul.f32 0.2, %v527_v9 }
 0x562   :  { %v529_v56 = vmax.f32 %v527_v9, %v528_v55 }
 0x564   :  { %v530_v27 = vsel %vm207_vm4, %v529_v56, -inf }
 0x565   :  { %531 = vmax.xlane.f32.xlu0 %v530_v27 }
 0x571   :  { %631 = vrot.lane.b32.xlu1 %v422_v29, %s1013_s2 }
 0x5ed   :  { %v614_v57 = vpop.xlane.xlu1 %613 }
 0x5ee   :  { %v615_v58 = vsub.f32 %v611_v53, %v614_v57 }
 0x5f0   :  { %v616_v26 = vmul.f32 1.442695, %v615_v58 }
 0x5f1   :  { %v632_v31 = vpop.permute.xlu1 %631 }
 0x5f2   :  { %977 = vpow2.f32 %v616_v26  ;;  %v640_v59 = vsel %vm230_vm3, %v632_v31, 0  ;;  %v532_v60 = vpop.xlane.xlu0 %531 }
 0x5f3   :  { %v533_v61 = vsub.f32 %v529_v56, %v532_v60  ;;  %933 = vmatpush3.bf16.msra.mxu1 %v640_v59 }
 0x5f4   :  { %944 = vmatprep.subr.bf16.mxu1 %v1009_v2 }
 0x5f5   :  { %v534_v62 = vmul.f32 1.442695, %v533_v61 }
 0x5f7   :  { %979 = vpow2.f32 %v534_v62 }
 0x5fc   :  { %v978_v63 = vpop.eup %977 }
 0x5fd   :  { %v618_v0 = vsel %vm207_vm4, %v978_v63, 0.0 }
 0x5fe   :  { %619 = vadd.xlane.f32.xlu0 %v618_v0 }
 0x601   :  { %v980_v1 = vpop.eup %979 }
 0x602   :  { %v536_v3 = vsel %vm207_vm4, %v980_v1, 0.0 }
 0x603   :  { %537 = vadd.xlane.f32.xlu0 %v536_v3 }
 0x619   :  { %633 = vrot.lane.b32.xlu0 %v846_v4, %s1013_s2  ;;  %s989_s2 = scalar_lea.vmem %s823_s13, 32 }
 0x61a   :  { %p991_p2 = scmp.lt.s32.totalorder %s989_s2, %s985_s12 }
 0x61c   :  { %p992_p3 = por %p991_p2, %p990_p1 }
 0x61e   :  { %p993_p4 = pnand %p992_p3, %p986_p0 }
 0x68b   :  { %v620_v5 = vpop.xlane.xlu0 %619 }
 0x68c   :  { %981 = vrcp.f32 %v620_v5 }
 0x690   :  { %v538_v6 = vpop.xlane.xlu0 %537 }
 0x691   :  { %983 = vrcp.f32 %v538_v6 }
 0x694   :  { %v634_v15 = vpop.permute.xlu0 %633 }
 0x696   :  { %v982_v7 = vpop.eup %981 }
 0x697   :  { %v622_v8 = vmul.f32 %v982_v7, %v978_v63 }
 0x699   :  { %v623_v10 = vpack.c.bf16 %v622_v8, %v622_v8 }
 0x69b   :  { %v984_v11 = vpop.eup %983  ;;  %935 = vmatmul.mubr.msk.bf16.vlgmr.msra.gmra.mrb[16].mxu1 %vm207_vm4, %v623_v10 }
 0x69c   :  { %v540_v12 = vmul.f32 %v984_v11, %v980_v1  ;;  %948 = vmatprep.mubr.msk.bf16.mxu1 %vm1010_vm1, %v1009_v2  ;;  %945 = vmatpush3.bf16.msra.mxu1 %v967_v43 }
 0x69d   :  { %946 = vmatprep.subr.bf16.mxu1 %v1009_v2 }
 0x69e   :  { %v541_v13 = vpack.c.bf16 %v540_v12, %v540_v12 }
 0x6a0   :  { %929 = vmatmul.mubr.msk.bf16.vlgmr.msra.gmra.mrb[16].mxu0 %vm207_vm4, %v541_v13  ;;  %947 = vmatpush3.bf16.msra.mxu1 %v968_v44 }
 0x6a1   :  { %940 = vmatprep.mubr.msk.bf16.mxu0 %vm1010_vm1, %v1009_v2  ;;  %939 = vmatpush3.bf16.msra.mxu0 %v966_v14  ;;  %v757_v2 = vld [vmem:[%s1256_s14] sm:$0x1] }
 0x76e   :  { %v676_v16 = vpop.f32.mrb[16].mxu1 }
 0x76f   :  { %v677_v17 = vadd.f32 %v676_v16, %v634_v15  ;;  %v936_v18 = vpop.f32.mrb[17].mxu1 }
 0x770   :  { %v679_v19 = vpop.f32.mrb[18].mxu1 }
 0x771   :  { %v682_v20 = vmax.f32 %v677_v17, 0.0  ;;  %v937_v21 = vpop.f32.mrb[19].mxu1 }
 0x773   :  { %v589_v22 = vpop.f32.mrb[16].mxu0  ;;  %684 = vrot.lane.b32.xlu1 %v682_v20, %s1014_s27 }
 0x774   :  { %v590_v23 = vadd.f32 %v846_v4, %v589_v22  ;;  %v930_v25 = vpop.f32.mrb[17].mxu0 }
 0x775   :  { %v592_v28 = vpop.f32.mrb[18].mxu0 }
 0x776   :  { %v595_v29 = vmax.f32 %v590_v23, 0.0  ;;  %v931_v30 = vpop.f32.mrb[19].mxu0 }
 0x778   :  { %596 = vst.msk [vmem:[#allocation2] sm:$0xff] %vm207_vm4, %v595_v29 }
 0x7e5   :  { %v685_v32 = vpop.permute.xlu1 %684 }
 0x7e6   :  { %687 = vst.msk [vmem:[#allocation2] sm:$0xff] %vm366_vm5, %v685_v32 }
 0x7ed   :  { %v688_v33 = vld [vmem:[#allocation2] sm:$0xff] }
 0x7ee   :  { %v689_v34 = vsel %vm378_vm6, %v688_v33, 0.0 }
 0x7ef   :  { %v690_v35 = vrot.slane %v689_v34, 4 }
 0x7f1   :  { %v691_v36 = vadd.f32 %v690_v35, %v689_v34 }
 0x7f3   :  { %v692_v37 = vrot.slane %v691_v36, 2 }
 0x7f5   :  { %v693_v38 = vadd.f32 %v692_v37, %v691_v36 }
 0x7f7   :  { %v694_v39 = vrot.slane %v693_v38, 1 }
 0x7f9   :  { %v695_v40 = vadd.f32 %v694_v39, %v693_v38 }
 0x7fb   :  { %v697_v41 = vmul.f32 0.125, %v695_v40 }
 0x7fd   :  { %v698_v42 = vpack.c.bf16 %v697_v41, %v697_v41 }
 0x7ff   :  { %941 = vmatmul.mubr.msk.bf16.vlgmr.msra.gmra.mrb[20].mxu0 %vm378_vm6, %v698_v42 }
 0x8d2   :  { %v745_v46 = vpop.f32.mrb[20].mxu0 }
 0x8d3   :  { %v746_v47 = vadd.f32 %v745_v46, %v701_v45  ;;  %v942_v48 = vpop.f32.mrb[21].mxu0 }
 0x8d4   :  { %v748_v49 = vpop.f32.mrb[22].mxu0 }
 0x8d5   :  { %v751_v50 = vmax.f32 %v746_v47, 0.0  ;;  %v943_v51 = vpop.f32.mrb[23].mxu0 }
 0x8d7   :  { %v752_v24 = vpack.c.bf16 %v751_v50, %v751_v50 }
 0x8d9   :  { %949 = vmatmul.mubr.msk.bf16.vlgmr.msra.gmra.mrb[20].mxu1 %vm770_vm7, %v752_v24 }
 0x9ac   :  { %v808_v52 = vpop.f32.mrb[20].mxu1 }
 0x9ad   :  { %v809_v53 = vadd.f32 %v808_v52, %v757_v2  ;;  %v950_v9 = vpop.f32.mrb[21].mxu1 }
 0x9ae   :  { %v811_v54 = vpop.f32.mrb[22].mxu1 }
 0x9af   :  { %v951_v55 = vpop.f32.mrb[23].mxu1  ;;  %815 = vst.msk [vmem:[#allocation3] sm:$0x1] %vm814_vm8, %v809_v53 }
 0x9b0   :  { %996 = shalt.err (!%p993_p4)
}
 0x9b1   :  { %s997_s24 = scalar_lea.hbm %s1257_s15, 16 }
 0x9b2   :  { %p998_p5 = scmp.ne.s32.totalorder %s1257_s15, %s997_s24  ;;  %p1001_p6 = scmp.lt.u32.totalorder %s997_s24, %s1257_s15 }
 0x9b4   :  { %p1003_p7 = pnand %p1001_p6, %p998_p5 }
 0x9b6   :  { %1006 = shalt.err (!%p1003_p7)
}
 0x9b7   :  { %825 = dma.vmem_to_hbm [thread:$0]  %s823_s13, 16, %s1257_s15, [#allocation4]  }
 0x9b8   :  { %1007 = dma.done.wait [#allocation4], 16  }
 0x9b9   :  { %1008 = vsyncadd [#allocation4], 4294967280 }
 0x9ba   :  { %829 = vsyncpa [#allocation4], 1 }

</bundles_post_ra>
